<compile_context>
chip_gen: v6e
topology: v6e:2x2x1
jax: 0.10.0
libtpu: 0.0.40
codegen_flags: <defaults>
</compile_context>

<pallas_src>
import functools
import math

import jax
import jax.numpy as jnp
from jax.experimental import pallas as pl
from jax.experimental.pallas import tpu as pltpu


def _round_down(x, m):
    return (x // m) * m


def _bottomup_loss_kernel(pred_ref, gt_ref, out_ref, acc_ref, *,
                          rows, tb, tiles_per_core, sub, needs_mask):
    c = pl.program_id(0)          # core / chunk axis ("parallel")
    i = pl.program_id(1)          # row-tile axis within the chunk ("arbitrary")

    @pl.when(i == 0)
    def _init():
        acc_ref[...] = jnp.zeros_like(acc_ref)

    # In-kernel upcast keeps HBM traffic at the native input width.
    pred = pred_ref[...].astype(jnp.float32)      # [tb, lane]
    gt = gt_ref[...].astype(jnp.float32)          # [tb, lane]

    term = (1.0 - gt) * jnp.log(1.0 - pred)       # [tb, lane]

    if needs_mask:
        # Ragged last tile / clamped padded tiles: zero rows past the real extent
        # (also neutralizes any garbage read from the out-of-bounds region).
        g = c * tiles_per_core + i
        row_ids = g * tb + jax.lax.broadcasted_iota(jnp.int32, term.shape, 0)
        term = jnp.where(row_ids < rows, term, 0.0)

    # Pure VPU accumulation: fold the row tile onto `sub` sublanes with
    # element-wise vreg adds; the cross-lane XLU reduce happens only at finalize.
    lane = term.shape[1]
    acc_ref[...] += term.reshape(tb // sub, sub, lane).sum(axis=0)

    @pl.when(i == tiles_per_core - 1)
    def _finalize():
        total = jnp.sum(jnp.sum(acc_ref[...], axis=1, keepdims=True),
                        axis=0, keepdims=True)            # (1, 1)
        out_ref[...] = -total.reshape(1, 1, 1)            # raw per-core partial


def bottomup_loss(pred_att, gt_att, alpha=10.0, tile_elems=None):
    """Pallas TPU implementation of BottomupLoss.forward.

    Works for any rank >= 2 input: the op reduces over dim 1 then takes a global
    mean, so only the total sum and R = numel / size(dim=1) matter.
    `tile_elems` optionally overrides the auto tile size (testing only).
    """
    assert pred_att.shape == gt_att.shape
    assert pred_att.ndim >= 2

    n_elems = int(pred_att.size)
    denom = n_elems // int(pred_att.shape[1])     # rows the torch .mean() averages

    # ---- Lane-dense repacking (global sum => 2-D layout is free to choose).
    lane = None
    for cand in (1024, 512, 256, 128):
        if n_elems % cand == 0:
            lane = cand
            break
    if lane is None:
        lane = int(pred_att.shape[-1])            # natural layout fallback
    pred2 = pred_att.reshape(-1, lane)
    gt2 = gt_att.reshape(-1, lane)
    rows = pred2.shape[0]
    in_bytes = pred2.dtype.itemsize

    # ---- Generation-aware tile / VMEM budget.
    try:
        vmem_cap = int(pltpu.get_tpu_info().vmem_capacity_bytes)
    except Exception:
        vmem_cap = 64 << 20                       # conservative (v7x-sized)
    if vmem_cap >= (96 << 20):                    # v5e / v6e: 128 MiB physical VMEM
        budget_elems = (8 << 20) // 4             # ~8 MiB f32-equiv per input tile
        vmem_limit = 100 << 20
    else:                                         # v7x: 64 MiB physical, 2 TCs
        budget_elems = (4 << 20) // 4
        vmem_limit = 48 << 20
    if tile_elems is not None:
        budget_elems = int(tile_elems)

    cap_rows = max(8, _round_down(budget_elems // lane, 8))
    if rows <= cap_rows:
        tb = rows                                 # full second-minor dim: always legal
    else:
        tb = cap_rows                             # multiple of 8
    n_tiles = pl.cdiv(rows, tb)

    # ---- 2-TensorCore split (v7x). On 1-TC chips the parallel axis just loops.
    num_cores = 2 if n_tiles >= 2 else 1
    tiles_per_core = pl.cdiv(n_tiles, num_cores)
    needs_mask = (n_tiles * tb != rows) or (num_cores * tiles_per_core != n_tiles)
    sub = math.gcd(tb, 8)

    def in_index(c, i):
        # Clamp fully-padded tiles of the last core chunk onto a valid block;
        # their contribution is zeroed by the in-kernel row mask.
        return (jnp.minimum(c * tiles_per_core + i, n_tiles - 1), 0)

    kernel = functools.partial(
        _bottomup_loss_kernel, rows=rows, tb=tb,
        tiles_per_core=tiles_per_core, sub=sub, needs_mask=needs_mask)

    partials = pl.pallas_call(
        kernel,
        out_shape=jax.ShapeDtypeStruct((num_cores, 1, 1), jnp.float32),
        grid=(num_cores, tiles_per_core),
        in_specs=[
            pl.BlockSpec((tb, lane), in_index),
            pl.BlockSpec((tb, lane), in_index),
        ],
        out_specs=pl.BlockSpec((1, 1, 1), lambda c, i: (c, 0, 0)),
        scratch_shapes=[pltpu.VMEM((sub, lane), jnp.float32)],
        compiler_params=pltpu.CompilerParams(
            dimension_semantics=("parallel", "arbitrary"),
            vmem_limit_bytes=vmem_limit,
        ),
        cost_estimate=pl.CostEstimate(
            flops=4 * n_elems,
            transcendentals=n_elems,
            bytes_accessed=2 * n_elems * in_bytes + num_cores * 4,
        ),
    )(pred2, gt2)

    # alpha / R applied outside the kernel: changing alpha never recompiles.
    return jnp.sum(partials) * (alpha / float(denom))


def bottomup_loss_ref(pred_att, gt_att, alpha=10.0):
    ce = -jnp.sum((1.0 - gt_att) * jnp.log(1.0 - pred_att), axis=1) * alpha
    return jnp.mean(ce)


if __name__ == "__main__":
    key = jax.random.PRNGKey(0)

    def make_inputs(k, shape):
        k1, k2 = jax.random.split(k)
        # pred must stay strictly below 1 so log(1 - pred) is finite (same
        # assumption as the PyTorch module).
        pred = jax.random.uniform(k1, shape, jnp.float32, minval=0.02, maxval=0.9)
        gt = jax.random.uniform(k2, shape, jnp.float32, minval=0.0, maxval=1.0)
        return pred, gt

    cases = [
        # (shape, tile_elems override) -- small shapes; overrides force the
        # multi-tile / masked / core-split code paths at tiny sizes.
        ((2, 4, 16, 16), None),        # lane-dense repack (N % 1024 == 0), 1 tile
        ((3, 5, 9, 9), 40 * 9),        # natural-lane fallback + ragged-tile mask
        ((24, 4, 16, 16), 8 * 1024),   # 3 tiles split over 2 chunks (clamped tile)
    ]

    all_ok = True
    for idx, (shape, te) in enumerate(cases):
        pred, gt = make_inputs(jax.random.fold_in(key, idx), shape)
        out = bottomup_loss(pred, gt, alpha=10.0, tile_elems=te)
        jax.block_until_ready(out)
        ref = bottomup_loss_ref(pred, gt, alpha=10.0)
        all_ok &= bool(jnp.allclose(out, ref, rtol=1e-5, atol=1e-5))

    assert all_ok
    print("KERNEL_OK")
</pallas_src>

<mosaic_0001>
module attributes {stable_mosaic.version = 11 : i64} {
  func.func @_bottomup_loss_kernel(%arg0: i32, %arg1: i32, %arg2: memref<2x1024xf32, #tpu.memory_space<vmem>>, %arg3: memref<2x1024xf32, #tpu.memory_space<vmem>>, %arg4: memref<1x1x1xf32, #tpu.memory_space<vmem>>, %arg5: memref<2x1024xf32, #tpu.memory_space<vmem>>) attributes {dimension_semantics = [#tpu.dimension_semantics<parallel>, #tpu.dimension_semantics<arbitrary>], iteration_bounds = array<i64: 1, 1>, scalar_prefetch = 0 : i64, scratch_operands = 1 : i64, tpu.core_type = #tpu.core_type<tc>, window_params = [{transform_indices = @transform_0, window_bounds = array<i64: 2, 1024>}, {transform_indices = @transform_1, window_bounds = array<i64: 2, 1024>}, {transform_indices = @transform_2, window_bounds = array<i64: 1, 1, 1>}]} {
    %c0_i32 = arith.constant 0 : i32
    %0 = arith.cmpi eq, %arg1, %c0_i32 : i32
    %1 = arith.extui %0 : i1 to i32
    %c0_i32_0 = arith.constant 0 : i32
    %2 = arith.cmpi ne, %1, %c0_i32_0 : i32
    scf.if %2 {
      %cst_12 = arith.constant 0.000000e+00 : f32
      %19 = vector.broadcast %cst_12 : f32 to vector<2x1024xf32>
      %c0_13 = arith.constant 0 : index
      %c0_14 = arith.constant 0 : index
      %20 = vector.load %arg5[%c0_13, %c0_14] : memref<2x1024xf32, #tpu.memory_space<vmem>>, vector<2x1024xf32>
      tpu.vector_store %arg5[%c0_13, %c0_14], %19 {strides = array<i32>} : memref<2x1024xf32, #tpu.memory_space<vmem>>, vector<2x1024xf32>,
    } else {
    }
    %c0 = arith.constant 0 : index
    %c0_1 = arith.constant 0 : index
    %3 = vector.load %arg2[%c0, %c0_1] : memref<2x1024xf32, #tpu.memory_space<vmem>>, vector<2x1024xf32>
    %c0_2 = arith.constant 0 : index
    %c0_3 = arith.constant 0 : index
    %4 = vector.load %arg3[%c0_2, %c0_3] : memref<2x1024xf32, #tpu.memory_space<vmem>>, vector<2x1024xf32>
    %cst = arith.constant 1.000000e+00 : f32
    %5 = vector.broadcast %cst : f32 to vector<2x1024xf32>
    %6 = arith.subf %5, %4 : vector<2x1024xf32>
    %cst_4 = arith.constant 1.000000e+00 : f32
    %7 = vector.broadcast %cst_4 : f32 to vector<2x1024xf32>
    %8 = arith.subf %7, %3 : vector<2x1024xf32>
    %9 = math.log %8 : vector<2x1024xf32>
    %10 = arith.mulf %6, %9 : vector<2x1024xf32>
    %c0_5 = arith.constant 0 : index
    %c0_6 = arith.constant 0 : index
    %11 = vector.load %arg5[%c0_5, %c0_6] : memref<2x1024xf32, #tpu.memory_space<vmem>>, vector<2x1024xf32>
    %12 = vector.shape_cast %10 : vector<2x1024xf32> to vector<1x2x1024xf32>
    %cst_7 = arith.constant dense<0.000000e+00> : vector<2x1024xf32>
    %13 = vector.multi_reduction <add>, %12, %cst_7 [0] : vector<1x2x1024xf32> to vector<2x1024xf32>
    %14 = arith.addf %11, %13 : vector<2x1024xf32>
    %c0_8 = arith.constant 0 : index
    %c0_9 = arith.constant 0 : index
    %15 = vector.load %arg5[%c0_8, %c0_9] : memref<2x1024xf32, #tpu.memory_space<vmem>>, vector<2x1024xf32>
    tpu.vector_store %arg5[%c0_8, %c0_9], %14 {strides = array<i32>} : memref<2x1024xf32, #tpu.memory_space<vmem>>, vector<2x1024xf32>,
    %c0_i32_10 = arith.constant 0 : i32
    %16 = arith.cmpi eq, %arg1, %c0_i32_10 : i32
    %17 = arith.extui %16 : i1 to i32
    %c0_i32_11 = arith.constant 0 : i32
    %18 = arith.cmpi ne, %17, %c0_i32_11 : i32
    scf.if %18 {
      %c0_12 = arith.constant 0 : index
      %c0_13 = arith.constant 0 : index
      %19 = vector.load %arg5[%c0_12, %c0_13] : memref<2x1024xf32, #tpu.memory_space<vmem>>, vector<2x1024xf32>
      %cst_14 = arith.constant dense<0.000000e+00> : vector<2xf32>
      %20 = vector.multi_reduction <add>, %19, %cst_14 [1] : vector<2x1024xf32> to vector<2xf32>
      %21 = vector.shape_cast %20 : vector<2xf32> to vector<2x1xf32>
      %cst_15 = arith.constant dense<0.000000e+00> : vector<1xf32>
      %22 = vector.multi_reduction <add>, %21, %cst_15 [0] : vector<2x1xf32> to vector<1xf32>
      %23 = vector.shape_cast %22 : vector<1xf32> to vector<1x1xf32>
      %24 = vector.shape_cast %23 : vector<1x1xf32> to vector<1x1x1xf32>
      %cst_16 = arith.constant 0.000000e+00 : f32
      %25 = vector.broadcast %cst_16 : f32 to vector<1x1x1xf32>
      %26 = arith.subf %25, %24 : vector<1x1x1xf32>
      %c0_17 = arith.constant 0 : index
      %c0_18 = arith.constant 0 : index
      %c0_19 = arith.constant 0 : index
      %27 = vector.load %arg4[%c0_17, %c0_18, %c0_19] : memref<1x1x1xf32, #tpu.memory_space<vmem>>, vector<1x1x1xf32>
      tpu.vector_store %arg4[%c0_17, %c0_18, %c0_19], %26 {strides = array<i32>} : memref<1x1x1xf32, #tpu.memory_space<vmem>>, vector<1x1x1xf32>,
    } else {
    }
    return
  }
  func.func @transform_0(%arg0: i32, %arg1: i32) -> (i32, i32) {
    %c1_i32 = arith.constant 1 : i32
    %0 = arith.muli %arg0, %c1_i32 : i32
    %1 = arith.addi %0, %arg1 : i32
    %c0_i32 = arith.constant 0 : i32
    %2 = arith.minsi %1, %c0_i32 : i32
    %c0_i32_0 = arith.constant 0 : i32
    %c0_i32_1 = arith.constant 0 : i32
    return %2, %c0_i32_0 : i32, i32
  }
  func.func @transform_1(%arg0: i32, %arg1: i32) -> (i32, i32) {
    %c1_i32 = arith.constant 1 : i32
    %0 = arith.muli %arg0, %c1_i32 : i32
    %1 = arith.addi %0, %arg1 : i32
    %c0_i32 = arith.constant 0 : i32
    %2 = arith.minsi %1, %c0_i32 : i32
    %c0_i32_0 = arith.constant 0 : i32
    %c0_i32_1 = arith.constant 0 : i32
    return %2, %c0_i32_0 : i32, i32
  }
  func.func @transform_2(%arg0: i32, %arg1: i32) -> (i32, i32, i32) {
    %c0_i32 = arith.constant 0 : i32
    %c0_i32_0 = arith.constant 0 : i32
    %c0_i32_1 = arith.constant 0 : i32
    return %arg0, %c0_i32, %c0_i32_0 : i32, i32, i32
  }
}

</mosaic_0001>

<bundles_post_ra>
// kernel: tpu_custom_call.1
= control target key start
LH: loop header
LB: loop body
LE: loop exit
PB: predicated region body
PF: predicated region fallthrough
CT: control target
= control target key end

     0   :  { %7 = vsyncpa [#allocation4], 0  ;;  %s290_s0 = inlined_call_operand.hbm [shape: f32[2,1024], index: 0, kind: input, shape index: {}]   ;;  %s291_s1 = inlined_call_operand.hbm [shape: f32[2,1024], index: 1, kind: input, shape index: {}]   ;;  %s292_s2 = inlined_call_operand.hbm [shape: f32[1,1,1], index: 2, kind: output, shape index: {}]  }
   0x1   :  { %8 = vsyncpa [#allocation7], 0 }
   0x2   :  { %9 = vsyncpa [#allocation5], 0  ;;  %s253_s9 = smov [#allocation3]   ;;  %s254_s11 = smov [#allocation6]  }
   0x3   :  { %s22_s10 = sshll.u32 %s253_s9, 4  ;;  %s38_s12 = sshll.u32 %s254_s11, 4  ;;  %s23_s10 = int_to_ptr.vmem [resolvable:$true] %s22_s10  ;;  %s39_s12 = int_to_ptr.vmem [resolvable:$true] %s38_s12 }
   0x4   :  { %s195_s13 = scalar_lea.vmem %s23_s10, 256  ;;  %p200_p1 = scmp.lt.s32.totalorder %s23_s10, %s23_s10 }
   0x5   :  { %p196_p0 = scmp.ne.s32.totalorder %s23_s10, %s195_s13  ;;  %p201_p2 = scmp.lt.s32.totalorder %s195_s13, %s195_s13 }
   0x7   :  { %p202_p3 = por %p201_p2, %p200_p1 }
   0x9   :  { %p203_p4 = pnand %p202_p3, %p196_p0 }
   0xb   :  { %206 = shalt.err (!%p203_p4)
}
   0xc   :  { %25 = dma.hbm_to_vmem [thread:$0]  %s290_s0, 256, %s23_s10, [#allocation4]  }
   0xd   :  { %s215_s16 = scalar_lea.vmem %s39_s12, 256  ;;  %p220_p6 = scmp.lt.s32.totalorder %s39_s12, %s39_s12 }
   0xe   :  { %p216_p5 = scmp.ne.s32.totalorder %s39_s12, %s215_s16  ;;  %p221_p7 = scmp.lt.s32.totalorder %s215_s16, %s215_s16 }
  0x10   :  { %p222_p8 = por %p221_p7, %p220_p6 }
  0x12   :  { %p223_p9 = pnand %p222_p8, %p216_p5 }
  0x14   :  { %226 = shalt.err (!%p223_p9)
}
  0x15   :  { %41 = dma.hbm_to_vmem [thread:$0]  %s291_s1, 256, %s39_s12, [#allocation7]  }
  0x16   :  { %247 = dma.done.wait [#allocation4], 256  }
  0x17   :  { %248 = vsyncadd [#allocation4], 4294967040 }
  0x18   :  { %249 = dma.done.wait [#allocation7], 256  }
  0x19   :  { %250 = vsyncadd [#allocation7], 4294967040  ;;  %v60_v0 = vld [vmem:[#allocation3] sm:$0xff]  ;;  %v61_v1 = vld [vmem:[#allocation3 + $0x8] sm:$0xff]  ;;  %v255_v4 = vmov 1983009808   ;;  %v93_v6 = vlaneseq }
  0x1a   :  { %v66_v2 = vsub.f32 1.0, %v60_v0  ;;  %v67_v3 = vsub.f32 1.0, %v61_v1  ;;  %v91_v5 = vunpack.c.l.s4 %v255_v4  ;;  %v62_v7 = vld [vmem:[#allocation6] sm:$0xff]  ;;  %v63_v8 = vld [vmem:[#allocation6 + $0x8] sm:$0xff]  ;;  %vm131_vm0 = vcmask 1041408   ;;  %s256_s0 = smov [#allocation8]  }
  0x1b   :  { %v94_v10 = vshrl.u32 %v93_v6, 7  ;;  %v64_v11 = vsub.f32 1.0, %v62_v7  ;;  %v65_v13 = vsub.f32 1.0, %v63_v8  ;;  %s165_s1 = sshll.u32 %s256_s0, 4  ;;  %vm157_vm1 = vcmask 0   ;;  %s166_s1 = int_to_ptr.vmem [resolvable:$true] %s165_s1 }
  0x1c   :  { %183 = vlog2.f32 %v66_v2  ;;  %v92_v9 = vunpack.c.0.s8 %v91_v5  ;;  %s227_s19 = scalar_lea.vmem %s166_s1, 16  ;;  %s231_s20 = scalar_lea.vmem %s166_s1, 32 }
  0x1d   :  { %185 = vlog2.f32 %v67_v3  ;;  %p228_p10 = scmp.ne.s32.totalorder %s166_s1, %s227_s19  ;;  %p232_p11 = scmp.lt.s32.totalorder %s166_s1, %s166_s1 }
  0x1e   :  { %v95_v16 = vsub.s32 %v92_v9, %v94_v10  ;;  %p233_p12 = scmp.lt.s32.totalorder %s231_s20, %s227_s19 }
  0x20   :  { %p234_p13 = por %p233_p12, %p232_p11 }
  0x22   :  { %p235_p0 = pnand %p234_p13, %p228_p10 }
  0x29   :  { %v184_v12 = vpop.eup %183 }
  0x2a   :  { %v186_v14 = vpop.eup %185  ;;  %v69_v15 = vmul.f32 0.6931472, %v184_v12 }
  0x2b   :  { %v71_v17 = vmul.f32 0.6931472, %v186_v14 }
  0x2c   :  { %v72_v18 = vmul.f32 %v69_v15, %v64_v11 }
  0x2d   :  { %v73_v19 = vmul.f32 %v71_v17, %v65_v13 }
  0x2e   :  { %v89_v20 = vcombine.high %v72_v18, %v72_v18  ;;  %v96_v21 = vrot.slane %v72_v18, %v95_v16 }
  0x2f   :  { %v106_v22 = vcombine.high %v73_v19, %v73_v19  ;;  %v113_v25 = vrot.slane %v73_v19, %v95_v16 }
  0x30   :  { %v103_v23 = vrot.slane %v89_v20, %v95_v16  ;;  %v104_v24 = vcombine.high %v96_v21, %v96_v21  ;;  %v132_v26 = vsel %vm131_vm0, %v96_v21, 0.0 }
  0x31   :  { %v120_v31 = vrot.slane %v106_v22, %v95_v16  ;;  %v121_v32 = vcombine.high %v113_v25, %v113_v25  ;;  %v139_v35 = vsel %vm131_vm0, %v113_v25, 0.0 }
  0x32   :  { %v105_v27 = vcombine.high %v103_v23, %v103_v23  ;;  %v133_v28 = vsel %vm131_vm0, %v104_v24, 0.0  ;;  %v135_v29 = vsel %vm131_vm0, %v103_v23, 0.0 }
  0x33   :  { %v134_v30 = vadd.f32 %v133_v28, %v132_v26  ;;  %v122_v37 = vcombine.high %v120_v31, %v120_v31  ;;  %v141_v38 = vsel %vm131_vm0, %v121_v32, 0.0  ;;  %v143_v40 = vsel %vm131_vm0, %v120_v31, 0.0 }
  0x34   :  { %v137_v33 = vsel %vm131_vm0, %v105_v27, 0.0 }
  0x35   :  { %v136_v34 = vadd.f32 %v135_v29, %v134_v30  ;;  %v145_v42 = vsel %vm131_vm0, %v122_v37, 0.0 }
  0x37   :  { %v138_v36 = vadd.f32 %v137_v33, %v136_v34 }
  0x39   :  { %v140_v39 = vadd.f32 %v139_v35, %v138_v36 }
  0x3b   :  { %v142_v41 = vadd.f32 %v141_v38, %v140_v39 }
  0x3d   :  { %v144_v43 = vadd.f32 %v143_v40, %v142_v41 }
  0x3f   :  { %v146_v44 = vadd.f32 %v145_v42, %v144_v43 }
  0x41   :  { %147 = vadd.xlane.f32.xlu0 %v146_v44 }
  0xca   :  { %v148_v45 = vpop.xlane.xlu0 %147 }
  0xcb   :  { %v149_v46 = vsel %vm131_vm0, %v148_v45, 0.0 }
  0xcc   :  { %v150_v47 = vrot.slane %v149_v46, 4 }
  0xce   :  { %v151_v48 = vadd.f32 %v150_v47, %v149_v46 }
  0xd0   :  { %v152_v49 = vrot.slane %v151_v48, 2 }
  0xd2   :  { %v153_v50 = vadd.f32 %v152_v49, %v151_v48 }
  0xd4   :  { %v154_v51 = vrot.slane %v153_v50, 1 }
  0xd6   :  { %v155_v52 = vadd.f32 %v154_v51, %v153_v50 }
  0xd8   :  { %v156_v53 = vsub.f32 0.0, %v155_v52 }
  0xda   :  { %158 = vst.msk [vmem:[#allocation8] sm:$0x1] %vm157_vm1, %v156_v53 }
  0xdb   :  { %238 = shalt.err (!%p235_p0)
}
  0xdc   :  { %168 = dma.vmem_to_hbm [thread:$0]  %s166_s1, 16, %s292_s2, [#allocation5]  }
  0xdd   :  { %251 = dma.done.wait [#allocation5], 16  }
  0xde   :  { %252 = vsyncadd [#allocation5], 4294967280 }
  0xdf   :  { %172 = vsyncpa [#allocation4], 1 }
  0xe0   :  { %173 = vsyncpa [#allocation7], 1 }
  0xe1   :  { %174 = vsyncpa [#allocation5], 1 }

</bundles_post_ra>
